<compile_context>
chip_gen: v7x
topology: tpu7x:2x2x1
jax: 0.10.0
libtpu: 0.0.40
codegen_flags: <defaults>
</compile_context>

<pallas_src>
import math
import functools

import jax
import jax.numpy as jnp
from jax.experimental import pallas as pl
from jax.experimental.pallas import tpu as pltpu


def _round_up(x, m):
    return ((x + m - 1) // m) * m


def _sublane(dt):
    return {4: 8, 2: 16, 1: 32}.get(jnp.dtype(dt).itemsize, 8)


def _tpu_vmem_and_cores():
    """Best-effort (vmem_capacity_bytes, num_tensorcores) query."""
    vmem = None
    cores = None
    try:
        info = pltpu.get_tpu_info()
        for a in ("vmem_capacity_bytes", "vmem_bytes", "vmem_size_bytes"):
            v = getattr(info, a, None)
            if v:
                vmem = int(v)
                break
        for a in ("num_cores", "tensorcores_per_chip", "cores_per_chip"):
            v = getattr(info, a, None)
            if v:
                cores = int(v)
                break
    except Exception:
        pass
    if vmem is None:
        vmem = 64 * 1024 * 1024           # conservative: v7x per-TC VMEM
    if cores is None:
        cores = 2 if vmem < 100 * 1024 * 1024 else 1
    return vmem, cores


# --- fast sin: Cody-Waite range reduction + degree-11 odd Taylor/Horner -----
# |err| ~ 1e-6 absolute for the argument ranges a Siren layer produces; all
# ops are plain VPU adds/muls/selects (no EUP / no long libm polynomial).
_INV_PI = 0.3183098861837907
_PI_HI = 3.140625                      # exact in 8 significand bits
_PI_LO = 9.676535897932046e-04         # pi - _PI_HI


def _fast_sin(z):
    n = jnp.floor(z * _INV_PI + 0.5)
    r = z - n * _PI_HI
    r = r - n * _PI_LO
    r2 = r * r
    p = -2.505210838544172e-08
    p = p * r2 + 2.755731922398589e-06
    p = p * r2 + (-1.984126984126984e-04)
    p = p * r2 + 8.333333333333333e-03
    p = p * r2 + (-1.666666666666667e-01)
    s = r + r * (r2 * p)
    odd = (n.astype(jnp.int32) & 1) == 1
    return jnp.where(odd, -s, s)


def _siren_kernel(x_ref, wt_ref, b_ref, o_ref, *, compute_dtype, fast_sin):
    # x_ref:  (tm, K)   input row tile            (input dtype; cast per tile)
    # wt_ref: (K, tn)   (w0 * W)^T column tile    (compute dtype)
    # b_ref:  (1, tn)   w0 * bias slice           (f32)
    # o_ref:  (tm, tn)  output tile               (out dtype)
    x = x_ref[...]
    if x.dtype != compute_dtype:
        x = x.astype(compute_dtype)          # per-tile narrow cast (VPU, cheap)
    z = jnp.dot(x, wt_ref[...], preferred_element_type=jnp.float32)
    z = z + b_ref[...]                       # f32 broadcast over rows
    s = _fast_sin(z) if fast_sin else jnp.sin(z)
    o_ref[...] = s.astype(o_ref.dtype)


def siren_forward(x, weight, bias=None, w0=1.0, *, tm=None, tn=None,
                  compute_dtype=None, out_dtype=None, fast_sin=True,
                  vmem_budget_bytes=None, vmem_limit_bytes=None):
    """Siren forward: sin(w0 * (x @ weight.T + bias)).

    x: (..., dim_in); weight: (dim_out, dim_in); bias: (dim_out,) or None.
    compute_dtype: optional narrow dtype (e.g. jnp.bfloat16) for the matmul
      operands (MXU); accumulation / bias / sin stay in f32.
    out_dtype: optional output dtype (e.g. jnp.bfloat16) to halve the output
      HBM stream when the consumer accepts it.
    fast_sin: use range-reduced odd polynomial (~1e-6 abs err) instead of
      jnp.sin (fewer VALU ops; helps VALU-bound v7x / borderline v6e).
    """
    orig_shape = x.shape
    dim_in = orig_shape[-1]
    dim_out = weight.shape[0]

    odt = jnp.dtype(out_dtype) if out_dtype is not None else jnp.dtype(x.dtype)
    cdt = jnp.dtype(compute_dtype) if compute_dtype is not None else jnp.dtype(x.dtype)

    x2d = x.reshape(-1, dim_in)
    M = x2d.shape[0]
    x_it = jnp.dtype(x2d.dtype).itemsize
    out_it = odt.itemsize
    cdt_it = cdt.itemsize

    if bias is None:                         # use_bias=False path
        bias = jnp.zeros((dim_out,), dtype=jnp.float32)

    # ---- chip-aware VMEM budget / megacore info ---------------------------
    vmem_cap, num_tc = _tpu_vmem_and_cores()
    small_vmem = vmem_cap < 100 * 1024 * 1024        # v7x-class (64 MiB/TC)
    if vmem_budget_bytes is None:
        vmem_budget_bytes = (40 if small_vmem else 80) * 1024 * 1024
    if vmem_limit_bytes is None:
        vmem_limit_bytes = (48 if small_vmem else 96) * 1024 * 1024

    # Row-tile sublane granularity (x tile stays in its own dtype; output tile
    # may be bf16 -> use the coarsest packing among the two).
    gran = max(_sublane(x2d.dtype), _sublane(odt))

    def _fits(tm_c, tn_c, w_bufs_c):
        # weight (+bias) buffers, double-buffered x/out tiles, and the f32
        # (tm, tn) intermediate the compiler stages for bias+sin.
        fixed = w_bufs_c * tn_c * (dim_in * cdt_it + 4)
        per = 2 * tm_c * (dim_in * x_it + tn_c * out_it) + tm_c * tn_c * 4
        return fixed + per <= vmem_budget_bytes

    # ---- tn: lane-dense output, prefer a fully-resident weight ------------
    n128 = _round_up(dim_out, 128)
    if tn is None:
        if _fits(gran, n128, 1):
            tn = n128                         # whole weight resident, DMA'd once
        else:
            for cand in (512, 256, 128):
                if cand < n128 and _fits(gran, cand, 2):
                    tn = cand
                    break
            if tn is None:
                tn = 128
    else:
        tn = min(_round_up(tn, 128), n128)
    N_pad = _round_up(dim_out, tn)
    w_bufs = 1 if N_pad == tn else 2          # grid-invariant weight/bias?

    # ---- tm: largest fitting power-of-two row tile -------------------------
    # Prefer (a) dividing M (no wrapper-side row padding / extra x pass) and
    # (b) >= 2*num_tc steps only when there is more than one TensorCore.
    min_steps = 2 * num_tc if num_tc > 1 else 1
    if tm is not None:
        tm = max(gran, _round_up(tm, gran))
    else:
        cap_tm = max(gran, _round_up(max(M, 1), gran))
        cands = [c for c in (4096, 2048, 1024, 512, 256, 128, 64, 32, 16, 8)
                 if gran <= c <= cap_tm and _fits(c, tn, w_bufs)]
        if not cands:
            cands = [gran]
        tm = None
        for c in cands:                                   # descending
            if M % c == 0 and pl.cdiv(M, c) >= min_steps:
                tm = c
                break
        if tm is None:
            for c in cands:
                if pl.cdiv(M, c) >= min_steps:
                    tm = c
                    break
        if tm is None:
            tm = cands[-1]                                # tiny-M fallback
    M_pad = _round_up(max(M, 1), tm)

    # ---- wrapper-side glue --------------------------------------------------
    # x: no cast, no copy unless the ragged tail forces row padding.
    # TODO(synk): handle the ragged tail with a masked final store instead of
    # padding when no fitting power-of-two tile divides M.
    xp = x2d if M_pad == M else jnp.pad(x2d, ((0, M_pad - M), (0, 0)))

    # Fold w0 into weight/bias in f32 *before* any narrow cast, then pad the
    # feature dim to a lane-dense multiple of 128.
    wt = (weight.astype(jnp.float32) * jnp.float32(w0)).T
    if N_pad != dim_out:
        wt = jnp.pad(wt, ((0, 0), (0, N_pad - dim_out)))
    wt = wt.astype(cdt)
    b2d = jnp.pad(bias.astype(jnp.float32) * jnp.float32(w0),
                  (0, N_pad - dim_out)).reshape(1, N_pad)

    grid = (M_pad // tm, N_pad // tn)
    weight_streams = 1 if w_bufs == 1 else grid[0]

    kern = functools.partial(_siren_kernel, compute_dtype=cdt,
                             fast_sin=bool(fast_sin))
    cost = pl.CostEstimate(
        flops=2 * M_pad * dim_in * N_pad,
        transcendentals=0 if fast_sin else M_pad * N_pad,
        bytes_accessed=(M_pad * dim_in * x_it
                        + weight_streams * dim_in * N_pad * cdt_it
                        + N_pad * 4
                        + M_pad * N_pad * out_it),
    )

    # TODO(synk): for very large dim_in (>= ~2048) add a K-reduction grid axis
    # ("arbitrary") with an f32 VMEM accumulator instead of a single K block.
    def _call(single_buffer):
        if w_bufs == 1:
            if single_buffer:
                wt_spec = pl.BlockSpec((dim_in, tn), lambda i, j: (0, 0),
                                       pipeline_mode=pl.Buffered(1))
                b_spec = pl.BlockSpec((1, tn), lambda i, j: (0, 0),
                                      pipeline_mode=pl.Buffered(1))
            else:
                wt_spec = pl.BlockSpec((dim_in, tn), lambda i, j: (0, 0))
                b_spec = pl.BlockSpec((1, tn), lambda i, j: (0, 0))
        else:
            wt_spec = pl.BlockSpec((dim_in, tn), lambda i, j: (0, j))
            b_spec = pl.BlockSpec((1, tn), lambda i, j: (0, j))
        return pl.pallas_call(
            kern,
            out_shape=jax.ShapeDtypeStruct((M_pad, N_pad), odt),
            grid_spec=pl.GridSpec(
                grid=grid,
                in_specs=[
                    pl.BlockSpec((tm, dim_in), lambda i, j: (i, 0)),
                    wt_spec,
                    b_spec,
                ],
                out_specs=pl.BlockSpec((tm, tn), lambda i, j: (i, j)),
            ),
            compiler_params=pltpu.CompilerParams(
                dimension_semantics=("parallel", "parallel"),
                vmem_limit_bytes=int(vmem_limit_bytes),
            ),
            cost_estimate=cost,
        )(xp, wt, b2d)

    if w_bufs == 1 and hasattr(pl, "Buffered"):
        try:
            out2d = _call(True)
        except Exception:
            out2d = _call(False)      # pipeline_mode unsupported -> plain spec
    else:
        out2d = _call(False)

    out2d = out2d[:M, :dim_out]
    return out2d.reshape(*orig_shape[:-1], dim_out)


def init_siren_params(key, dim_in, dim_out, w0=1.0, c=6.0, is_first=False,
                      use_bias=True):
    w_std = (1.0 / dim_in) if is_first else (math.sqrt(c / dim_in) / w0)
    weight = jax.random.uniform(
        key, (dim_out, dim_in), dtype=jnp.float32,
        minval=-w_std, maxval=w_std)
    # PyTorch module leaves bias at zeros (init_ only touches the weight).
    bias = jnp.zeros((dim_out,), dtype=jnp.float32) if use_bias else None
    return weight, bias


if __name__ == "__main__":
    key = jax.random.PRNGKey(0)
    k_x, k_w = jax.random.split(key)

    batch, seq, dim_in, dim_out = 2, 8, 32, 32
    w0 = 30.0

    x = jax.random.normal(k_x, (batch, seq, dim_in), dtype=jnp.float32)
    weight, bias = init_siren_params(k_w, dim_in, dim_out, w0=w0,
                                     is_first=False, use_bias=True)

    # Pure-JAX reference (matches F.linear + Sine semantics).
    ref = jnp.sin(w0 * (jnp.einsum("bsi,oi->bso", x, weight) + bias))

    # Exact-sin f32 path: tight tolerance.
    out = jax.block_until_ready(
        siren_forward(x, weight, bias, w0=w0, fast_sin=False))
    assert out.shape == (batch, seq, dim_out)
    assert jnp.allclose(out, ref, atol=2e-5, rtol=2e-5)

    # Default fast-sin path (range reduction + degree-11 odd poly).
    out_f = jax.block_until_ready(siren_forward(x, weight, bias, w0=w0))
    assert out_f.shape == (batch, seq, dim_out)
    assert float(jnp.max(jnp.abs(out_f - ref))) < 1e-4

    # use_bias=False path (bias is None, as in the PyTorch module).
    w_nb, b_nb = init_siren_params(k_w, dim_in, dim_out, w0=w0, use_bias=False)
    out_nb = jax.block_until_ready(
        siren_forward(x, w_nb, b_nb, w0=w0, fast_sin=False))
    ref_nb = jnp.sin(w0 * jnp.einsum("bsi,oi->bso", x, w_nb))
    assert jnp.allclose(out_nb, ref_nb, atol=2e-5, rtol=2e-5)

    # bf16 MXU operands + bf16 output (v6e/v7x); f32 accumulate/bias/sin.
    out_bf = jax.block_until_ready(
        siren_forward(x, weight, bias, w0=w0,
                      compute_dtype=jnp.bfloat16, out_dtype=jnp.bfloat16))
    assert out_bf.shape == (batch, seq, dim_out)
    assert out_bf.dtype == jnp.bfloat16
    assert float(jnp.mean(jnp.abs(out_bf.astype(jnp.float32) - ref))) < 0.05

    print("KERNEL_OK")
</pallas_src>

<mosaic_0001>
module attributes {stable_mosaic.version = 11 : i64} {
  func.func @_siren_kernel(%arg0: i32, %arg1: i32, %arg2: memref<8x32xf32, #tpu.memory_space<vmem>>, %arg3: memref<32x128xf32, #tpu.memory_space<vmem>>, %arg4: memref<1x128xf32, #tpu.memory_space<vmem>>, %arg5: memref<8x128xf32, #tpu.memory_space<vmem>>) attributes {dimension_semantics = [#tpu.dimension_semantics<parallel>, #tpu.dimension_semantics<parallel>], iteration_bounds = array<i64: 2, 1>, scalar_prefetch = 0 : i64, scratch_operands = 0 : i64, tpu.core_type = #tpu.core_type<tc>, window_params = [{transform_indices = @transform_0, window_bounds = array<i64: 8, 32>}, {pipeline_mode = #tpu.pipeline_mode<synchronous>, transform_indices = @transform_1, window_bounds = array<i64: 32, 128>}, {pipeline_mode = #tpu.pipeline_mode<synchronous>, transform_indices = @transform_2, window_bounds = array<i64: 1, 128>}, {transform_indices = @transform_3, window_bounds = array<i64: 8, 128>}]} {
    %c0 = arith.constant 0 : index
    %c0_0 = arith.constant 0 : index
    %0 = vector.load %arg2[%c0, %c0_0] : memref<8x32xf32, #tpu.memory_space<vmem>>, vector<8x32xf32>
    %c0_1 = arith.constant 0 : index
    %c0_2 = arith.constant 0 : index
    %1 = vector.load %arg3[%c0_1, %c0_2] : memref<32x128xf32, #tpu.memory_space<vmem>>, vector<32x128xf32>
    %cst = arith.constant dense<0.000000e+00> : vector<8x128xf32>
    %2 = tpu.matmul %0, %1, %cst {dimension_numbers = #tpu.dot_dimension_numbers<[1], [0], [0], [1], [0, 0, 1, 1], [], []>} : vector<8x32xf32>, vector<32x128xf32>, vector<8x128xf32> -> vector<8x128xf32>
    %c0_3 = arith.constant 0 : index
    %c0_4 = arith.constant 0 : index
    %3 = vector.load %arg4[%c0_3, %c0_4] : memref<1x128xf32, #tpu.memory_space<vmem>>, vector<1x128xf32>
    %4 = vector.broadcast %3 : vector<1x128xf32> to vector<8x128xf32>
    %5 = arith.addf %2, %4 : vector<8x128xf32>
    %6 = math.sin %5 : vector<8x128xf32>
    %c0_5 = arith.constant 0 : index
    %c0_6 = arith.constant 0 : index
    %7 = vector.load %arg5[%c0_5, %c0_6] : memref<8x128xf32, #tpu.memory_space<vmem>>, vector<8x128xf32>
    tpu.vector_store %arg5[%c0_5, %c0_6], %6 {strides = array<i32>} : memref<8x128xf32, #tpu.memory_space<vmem>>, vector<8x128xf32>,
    return
  }
  func.func @transform_0(%arg0: i32, %arg1: i32) -> (i32, i32) {
    %c0_i32 = arith.constant 0 : i32
    %c0_i32_0 = arith.constant 0 : i32
    return %arg0, %c0_i32 : i32, i32
  }
  func.func @transform_1(%arg0: i32, %arg1: i32) -> (i32, i32) {
    %c0_i32 = arith.constant 0 : i32
    %c0_i32_0 = arith.constant 0 : i32
    %c0_i32_1 = arith.constant 0 : i32
    return %c0_i32, %c0_i32_0 : i32, i32
  }
  func.func @transform_2(%arg0: i32, %arg1: i32) -> (i32, i32) {
    %c0_i32 = arith.constant 0 : i32
    %c0_i32_0 = arith.constant 0 : i32
    %c0_i32_1 = arith.constant 0 : i32
    return %c0_i32, %c0_i32_0 : i32, i32
  }
  func.func @transform_3(%arg0: i32, %arg1: i32) -> (i32, i32) {
    %c0_i32 = arith.constant 0 : i32
    return %arg0, %arg1 : i32, i32
  }
}

module attributes {stable_mosaic.version = 11 : i64} {
  func.func @_siren_kernel(%arg0: i32, %arg1: i32, %arg2: memref<8x32xf32, #tpu.memory_space<vmem>>, %arg3: memref<32x128xf32, #tpu.memory_space<vmem>>, %arg4: memref<1x128xf32, #tpu.memory_space<vmem>>, %arg5: memref<8x128xf32, #tpu.memory_space<vmem>>) attributes {dimension_semantics = [#tpu.dimension_semantics<parallel>, #tpu.dimension_semantics<parallel>], iteration_bounds = array<i64: 2, 1>, scalar_prefetch = 0 : i64, scratch_operands = 0 : i64, tpu.core_type = #tpu.core_type<tc>, window_params = [{transform_indices = @transform_0, window_bounds = array<i64: 8, 32>}, {pipeline_mode = #tpu.pipeline_mode<synchronous>, transform_indices = @transform_1, window_bounds = array<i64: 32, 128>}, {pipeline_mode = #tpu.pipeline_mode<synchronous>, transform_indices = @transform_2, window_bounds = array<i64: 1, 128>}, {transform_indices = @transform_3, window_bounds = array<i64: 8, 128>}]} {
    %c0 = arith.constant 0 : index
    %c0_0 = arith.constant 0 : index
    %0 = vector.load %arg2[%c0, %c0_0] : memref<8x32xf32, #tpu.memory_space<vmem>>, vector<8x32xf32>
    %c0_1 = arith.constant 0 : index
    %c0_2 = arith.constant 0 : index
    %1 = vector.load %arg3[%c0_1, %c0_2] : memref<32x128xf32, #tpu.memory_space<vmem>>, vector<32x128xf32>
    %cst = arith.constant dense<0.000000e+00> : vector<8x128xf32>
    %2 = tpu.matmul %0, %1, %cst {dimension_numbers = #tpu.dot_dimension_numbers<[1], [0], [0], [1], [0, 0, 1, 1], [], []>} : vector<8x32xf32>, vector<32x128xf32>, vector<8x128xf32> -> vector<8x128xf32>
    %c0_3 = arith.constant 0 : index
    %c0_4 = arith.constant 0 : index
    %3 = vector.load %arg4[%c0_3, %c0_4] : memref<1x128xf32, #tpu.memory_space<vmem>>, vector<1x128xf32>
    %4 = vector.broadcast %3 : vector<1x128xf32> to vector<8x128xf32>
    %5 = arith.addf %2, %4 : vector<8x128xf32>
    %6 = math.sin %5 : vector<8x128xf32>
    %c0_5 = arith.constant 0 : index
    %c0_6 = arith.constant 0 : index
    %7 = vector.load %arg5[%c0_5, %c0_6] : memref<8x128xf32, #tpu.memory_space<vmem>>, vector<8x128xf32>
    tpu.vector_store %arg5[%c0_5, %c0_6], %6 {strides = array<i32>} : memref<8x128xf32, #tpu.memory_space<vmem>>, vector<8x128xf32>,
    return
  }
  func.func @transform_0(%arg0: i32, %arg1: i32) -> (i32, i32) {
    %c0_i32 = arith.constant 0 : i32
    %c0_i32_0 = arith.constant 0 : i32
    return %arg0, %c0_i32 : i32, i32
  }
  func.func @transform_1(%arg0: i32, %arg1: i32) -> (i32, i32) {
    %c0_i32 = arith.constant 0 : i32
    %c0_i32_0 = arith.constant 0 : i32
    %c0_i32_1 = arith.constant 0 : i32
    return %c0_i32, %c0_i32_0 : i32, i32
  }
  func.func @transform_2(%arg0: i32, %arg1: i32) -> (i32, i32) {
    %c0_i32 = arith.constant 0 : i32
    %c0_i32_0 = arith.constant 0 : i32
    %c0_i32_1 = arith.constant 0 : i32
    return %c0_i32, %c0_i32_0 : i32, i32
  }
  func.func @transform_3(%arg0: i32, %arg1: i32) -> (i32, i32) {
    %c0_i32 = arith.constant 0 : i32
    return %arg0, %arg1 : i32, i32
  }
}

</mosaic_0001>

<bundles_post_ra>
// kernel: tpu_custom_call.1
= control target key start
LH: loop header
LB: loop body
LE: loop exit
PB: predicated region body
PF: predicated region fallthrough
CT: control target
= control target key end

     0   :  { %8 = vsyncpa [#allocation3], 0  ;;  %s1067_s0 = inlined_call_operand.hbm [shape: f32[16,32], index: 0, kind: input, shape index: {}]   ;;  %s1068_s1 = inlined_call_operand.hbm [shape: f32[32,128], index: 1, kind: input, shape index: {}]   ;;  %s1069_s2 = inlined_call_operand.vmem [shape: f32[1,128], index: 2, kind: input, shape index: {}]   ;;  %s1070_s3 = inlined_call_operand.hbm [shape: f32[16,128], index: 3, kind: output, shape index: {}]  }
   0x1   :  { %10 = vsyncpa [#allocation3 + $0x1], 0 }
   0x2   :  { %11 = vsyncpa [#allocation6], 0 }
   0x3   :  { %12 = vsyncpa [#allocation4], 0 }
   0x4   :  { %14 = vsyncpa [#allocation4 + $0x1], 0  ;;  %s825_s12 = smov 0   ;;  %s827_s13 = smov 0  }
   0x5   :  { %s829_s14 = smov 0   ;;  %s831_s15 = smov 0  }
   0x6   :  { %s833_s16 = smov 0   ;;  %s835_s17 = smov 0  }
   0x7 LB: > { %s510_s18 = sadd.s32 4294967295, %s789_s17   ;;  %s511_s19 = sadd.s32 4294967294, %s789_s17   ;;  %s789_s17 = sphi %s835_s17, %s20_s17   ;;  %s785_s16 = sphi %s833_s16, %s1094_s16   ;;  %s781_s15 = sphi %s831_s15, %s1093_s15   ;;  %s777_s14 = sphi %s829_s14, %s1092_s14   ;;  %s773_s13 = sphi %s827_s13, %s1091_s13   ;;  %s769_s12 = sphi %s825_s12, %s1090_s12  }
   0x8   : > { %p52_p0 = scmp.ne.s32.totalorder %s773_s13, %s769_s12  ;;  %p859_p1 = scmp.eq.s32.totalorder %s510_s18, 0 }
   0x9   : > { %p863_p2 = scmp.eq.s32.totalorder %s510_s18, 1  ;;  %p126_p3 = scmp.eq.s32.totalorder %s511_s19, 1 }
   0xa   : > { %s1075_s20 = scalar_select %p859_p1, 1, 0 }
   0xb   : > { %s1076_s21 = scalar_select %p863_p2, 1, 0 }
   0xc   : > { %p869_p4 = por %p859_p1, %p52_p0  ;;  %p512_p5 = scmp.ge.s32.totalorder %s789_s17, 1 }
   0xd   : > { %p874_p6 = por %p126_p3, %p52_p0  ;;  %p133_p7 = scmp.lt.s32.totalorder %s789_s17, 3 }
   0xe   : > { %s1077_s22 = scalar_select %p869_p4, 1, 0 }
   0xf   : > { %s1078_s23 = scalar_select %p874_p6, 1, 0 }
  0x10   : > { %p879_p8 = pnand %p512_p5, %p133_p7  ;;  %s791_s25 = smov [#allocation5]  }
  0x11   : > { %s145_s26 = sshll.u32 %s791_s25, 4  ;;  %s32_s28 = sadd.s32 1, %s785_s16  ;;  %s146_s26 = int_to_ptr.vmem [resolvable:$true] %s145_s26 }
  0x12   : > { %s1079_s24 = scalar_select %p879_p8, 1, 0 }
  0x13   : > { %p565_p9 = pneg %p879_p8  ;;  %s645_s4 = scalar_lea.hbm %s1068_s1, 512 }
  0x14   : > { %p646_p12 = scmp.ne.s32.totalorder %s1068_s1, %s645_s4  ;;  %p652_p5 = scmp.lt.u32.totalorder %s645_s4, %s1068_s1 }
  0x15   : > { %p888_p11 = pnand %p565_p9, %p859_p1 }
  0x17   : > { %p647_p13 = pneg %p888_p11 }
  0x19   : > { %p648_p0 = pnand %p647_p13, %p646_p12 }
  0x1b   : > { %p649_p3 = pneg %p648_p0 }
  0x1d   : > { %p654_p7 = pnand %p652_p5, %p649_p3 }
  0x1f   : > { %657 = shalt.err (!%p654_p7)
}
  0x20   : > { %s658_s9 = scalar_lea.vmem %s146_s26, 512  ;;  %p666_p1 = scmp.lt.s32.totalorder %s146_s26, %s146_s26 }
  0x21   : > { %p659_p9 = scmp.ne.s32.totalorder %s146_s26, %s658_s9  ;;  %p667_p4 = scmp.lt.s32.totalorder %s658_s9, %s658_s9 }
  0x23   : > { %p661_p10 = pnand %p659_p9, %p647_p13  ;;  %p668_p8 = por %p667_p4, %p666_p1 }
  0x25   : > { %p662_p6 = pneg %p661_p10 }
  0x27   : > { %p669_p2 = pnand %p668_p8, %p662_p6 }
  0x29   : > { %672 = shalt.err (!%p669_p2)
}
  0x2a   : > { %s792_s10 = smov 128   ;;  %s793_s11 = smov 8  }
  0x2b   : > { %568 = dma.hbm_to_vmem [thread:$0]  (!%p888_p11), %s1068_s1, 512, %s146_s26, [#allocation6], %s792_s10, %s792_s10, %s793_s11  }
  0x2c   : > { %p34_p1 = scmp.ge.s32.totalorder %s32_s28, 2  ;;  %s39_s25 = sadd.s32 1, %s777_s14 }
  0x2d   : > { %p46_p2 = scmp.ne.s32.totalorder %s777_s14, %s773_s13  ;;  %p47_p4 = scmp.eq.s32.totalorder %s789_s17, 0 }
  0x2e   : > { %s1096_s28 = smov (%p34_p1, %s32_s28), 0  ;;  %p1082_p8 = scmp.ne.s32.totalorder %s1076_s21, 0 }
  0x2f   : > { %p915_p6 = por %p47_p4, %p46_p2  ;;  %s36_s27 = ssub.s32 %s785_s16, %s1096_s28 }
  0x30   : > { %p921_p10 = por %p1082_p8, %p46_p2  ;;  %p578_p12 = scmp.lt.s32.totalorder %s789_s17, 2 }
  0x31   : > { %p37_p11 = scmp.eq.s32.totalorder %s36_s27, 0  ;;  %s162_s26 = sand.u32 1, %s777_s14  }
  0x32   : > { %s515_s4 = sshll.u32 %s162_s26, 3  ;;  %s516_s6 = sshll.u32 %s785_s16, 7 }
  0x33   : > { %s930_s5 = scalar_select %p37_p11, %s777_s14, %s39_s25  }
  0x34   : > { %s936_s9 = scalar_lea.hbm %s1067_s0, %s516_s6  ;;  %s166_s21 = scalar_lea.vmem [#allocation2], %s515_s4 }
  0x35   : > { %s173_s10 = sshll.u32 %s166_s21, 4  ;;  %p942_p13 = pnand %p578_p12, %p915_p6  ;;  %s938_s10 = int_to_ptr.vmem [resolvable:$true] %s173_s10 }
  0x36   : > { %s163_s18 = scalar_lea.sflag [#allocation3], %s162_s26  ;;  %s673_s19 = scalar_lea.hbm %s936_s9, 128 }
  0x37   : > { %p674_p0 = scmp.ne.s32.totalorder %s936_s9, %s673_s19  ;;  %p675_p3 = pneg %p942_p13 }
  0x38   : > { %s678_s4 = scalar_lea.hbm %s1067_s0, 256  ;;  %p679_p9 = scmp.lt.u32.totalorder %s936_s9, %s1067_s0 }
  0x39   : > { %p676_p5 = pnand %p675_p3, %p674_p0  ;;  %p680_p1 = scmp.lt.u32.totalorder %s678_s4, %s673_s19 }
  0x3a   : > { %p682_p4 = scmp.lt.u32.totalorder %s673_s19, %s936_s9 }
  0x3b   : > { %p677_p7 = pneg %p676_p5  ;;  %p681_p2 = por %p680_p1, %p679_p9 }
  0x3d   : > { %p683_p6 = por %p682_p4, %p681_p2 }
  0x3f   : > { %p684_p8 = pnand %p683_p6, %p677_p7 }
  0x41   : > { %687 = shalt.err (!%p684_p8)
}
  0x42   : > { %s688_s26 = scalar_lea.vmem %s938_s10, 128  ;;  %s794_s7 = smov [#allocation2]  }
  0x43   : > { %p689_p12 = scmp.ne.s32.totalorder %s938_s10, %s688_s26  ;;  %s693_s8 = sshll.u32 %s794_s7, 4  ;;  %s694_s8 = int_to_ptr.vmem [resolvable:$false] %s693_s8 }
  0x44   : > { %s695_s21 = scalar_lea.vmem %s694_s8, 256  ;;  %p696_p5 = scmp.lt.s32.totalorder %s938_s10, %s694_s8 }
  0x45   : > { %p691_p11 = pnand %p689_p12, %p675_p3  ;;  %p697_p9 = scmp.lt.s32.totalorder %s695_s21, %s688_s26 }
  0x47   : > { %p692_p0 = pneg %p691_p11  ;;  %p698_p1 = por %p697_p9, %p696_p5 }
  0x49   : > { %p699_p2 = pnand %p698_p1, %p692_p0 }
  0x4b   : > { %702 = shalt.err (!%p699_p2)
}
  0x4c   : > { %572 = dma.hbm_to_vmem [thread:$0]  (!%p942_p13), %s936_s9, 128, %s938_s10, %s163_s18  }
  0x4d   : > { %p1085_p7 = scmp.ne.s32.totalorder %s1079_s24, 0 }
  0x4e   : > { %s974_s19 = sand.u32 (!%p1085_p7), 1, %s773_s13   ;;  %p1086_p3 = scmp.ne.s32.totalorder (!%p1085_p7), %s1077_s22, 0 }
  0x4f   : > { %182 = sbr.rel (%p1085_p7) target bundleno = 408 (0x198), region = 32  ;;  %s518_s25 = sshll.u32 (!%p1085_p7), %s974_s19, 3 }
  0x50   : > { %s185_s27 = scalar_lea.sflag (!%p1085_p7), [#allocation3], %s974_s19  ;;  %s188_s4 = scalar_lea.vmem (!%p1085_p7), [#allocation2], %s518_s25 }
  0x56   : > { %756 = dma.done.wait (%p1086_p3), %s185_s27, 128  }
  0x57   : > { %758 = vsyncadd (%p1086_p3), %s185_s27, 4294967168  ;;  %p1087_p13 = scmp.ne.s32.totalorder %s1075_s20, 0 }
  0x59   : > { %760 = dma.done.wait (%p1087_p13), [#allocation6], 512  }
  0x5a   : > { %762 = vsyncadd (%p1087_p13), [#allocation6], 4294966784  ;;  %v795_v0 = vmov 0.0|0.0   ;;  %vm796_vm0 = vmmov 0   ;;  %v797_v1 = vmov 0.0   ;;  %v216_v2 = vld [vmem:[#allocation5] sm:$0xff] }
  0x5b   : > { %547 = vmatprep.subr.bf16.mxu0 %v795_v0  ;;  %544 = vmatprep.mubr.msk.f32.mxu0 %vm796_vm0, %v797_v1  ;;  %v217_v3 = vld [vmem:[#allocation5 + $0x8] sm:$0xff]  ;;  %v218_v4 = vld [vmem:[#allocation5 + $0x10] sm:$0xff]  ;;  %v219_v6 = vld [vmem:[#allocation5 + $0x18] sm:$0xff]  ;;  %vm227_vm1 = vcmask 261120   ;;  %v798_v23 = vmov 683565275  }
  0x5c   : > { %v548_v5 = vpack.c.bf16 %v217_v3, %v216_v2  ;;  %v551_v7 = vpack.c.bf16 %v219_v6, %v218_v4  ;;  %v215_v8 = vld [vmem:[%s188_s4] sm:$0xff]  ;;  %v799_v25 = vmov 2475754826   ;;  %v800_v28 = vmov 2131351028   ;;  %s528_s24 = sshll.u32 %s781_s15, 7 }
  0x5d   : > { %v521_v9 = vld [vmem:[%s1069_s2] ss:$0 sm:$0xff]  ;;  %v801_v31 = vmov 2102212464   ;;  %v802_v34 = vmov 920167782   ;;  %s1018_s29 = scalar_lea.hbm %s1070_s3, %s528_s24 }
  0x5e   : > { %549 = vmatpush3.bf16.msra.mxu0 %v548_v5  ;;  %v803_v37 = vmov 1326507024   ;;  %s214_s9 = scalar_lea.vmem [#allocation7], %s518_s25  ;;  %s407_s15 = scalar_lea.sflag [#allocation4], %s974_s19 }
  0x5f   : > { %550 = vmatprep.subr.bf16.mxu0 %v795_v0  ;;  %s421_s10 = sshll.u32 %s214_s9, 4  ;;  %s804_s26 = smov [#allocation7]   ;;  %s1020_s10 = int_to_ptr.vmem [resolvable:$true] %s421_s10 }
  0x60   : > { %s703_s6 = scalar_lea.vmem %s1020_s10, 128  ;;  %s707_s7 = sshll.u32 %s804_s26, 4  ;;  %s708_s7 = int_to_ptr.vmem [resolvable:$false] %s707_s7 }
  0x61   : > { %p704_p4 = scmp.ne.s32.totalorder %s1020_s10, %s703_s6  ;;  %s709_s8 = scalar_lea.vmem %s708_s7, 256 }
  0x62   : > { %552 = vmatpush3.bf16.msra.mxu0 %v551_v7  ;;  %p710_p12 = scmp.lt.s32.totalorder %s1020_s10, %s708_s7  ;;  %p711_p11 = scmp.lt.s32.totalorder %s709_s8, %s703_s6 }
  0x63   : > { %p705_p6 = pnand %p704_p4, %p921_p10 }
  0x64   : > { %p712_p0 = por %p711_p11, %p710_p12 }
  0x65   : > { %545 = vmatmul.mubr.msk.f32.vlgmr.msra.gmra.mrb[0].mxu0 %vm227_vm1, %v215_v8  ;;  %p706_p8 = pneg %p705_p6 }
  0x67   : > { %p713_p5 = pnand %p712_p0, %p706_p8 }
 0x138   : > { %v297_v10 = vpop.f32.mrb[0].mxu0 }
 0x139   : > { %v991_v11 = vadd.f32 %v521_v9, %v297_v10  ;;  %v546_v12 = vpop.f32.mrb[1].mxu0 }
 0x13b   : > { %v304_v13 = vand.u32 2139095040, %v991_v11  ;;  %v301_v17 = vand.u32 2147483647, %v991_v11  ;;  %vm303_vm9 = vcmp.lt.s32.totalorder %v991_v11, 0  ;;  %vm393_vm14 = vweird.f32 %v991_v11 }
 0x13d   : > { %v305_v14 = vshrl.u32 %v304_v13, 23  ;;  %v308_v20 = vand.u32 8388607, %v301_v17  ;;  %vm302_vm10 = vcmp.le.f32.partialorder %v301_v17, 0.7853982 }
 0x13f   : > { %v523_v15 = vadd.s32 4294967169, %v305_v14  ;;  %v309_v39 = vor.u32 8388608, %v308_v20 }
 0x141   : > { %v311_v16 = vadd.s32 1, %v523_v15  ;;  %v349_v53 = vshll.u32 %v309_v39, 8 }
 0x143   : > { %vm312_vm2 = vcmp.gt.s32.totalorder %v311_v16, 0 }
 0x144   : > { %v313_v18 = vsel %vm312_vm2, %v311_v16, 0 }
 0x145   : > { %v315_v19 = vand.u32 31, %v313_v18  ;;  %v314_v22 = vshrl.u32 %v313_v18, 5 }
 0x147   : > { %v316_v21 = vsub.s32 32, %v315_v19  ;;  %v318_v24 = vshll.u32 %v798_v23, %v315_v19  ;;  %v321_v26 = vshll.u32 %v799_v25, %v315_v19  ;;  %v324_v30 = vshll.u32 %v800_v28, %v315_v19 }
 0x148   : > { %v327_v33 = vshll.u32 %v801_v31, %v315_v19  ;;  %v330_v36 = vshll.u32 %v802_v34, %v315_v19  ;;  %vm333_vm3 = vcmp.lt.s32.totalorder %v314_v22, 1  ;;  %vm336_vm4 = vcmp.lt.s32.totalorder %v314_v22, 4 }
 0x149   : > { %v319_v27 = vshrl.u32 %v799_v25, %v316_v21  ;;  %v322_v29 = vshrl.u32 %v800_v28, %v316_v21  ;;  %v325_v32 = vshrl.u32 %v801_v31, %v316_v21  ;;  %v328_v35 = vshrl.u32 %v802_v34, %v316_v21 }
 0x14a   : > { %v331_v38 = vshrl.u32 %v803_v37, %v316_v21  ;;  %v317_v48 = vshrl.u32 %v798_v23, %v316_v21  ;;  %vm335_vm5 = vcmp.lt.s32.totalorder %v314_v22, 3  ;;  %vm334_vm6 = vcmp.lt.s32.totalorder %v314_v22, 2 }
 0x14b   : > { %v320_v40 = vor.u32 %v319_v27, %v318_v24  ;;  %v323_v41 = vor.u32 %v322_v29, %v321_v26  ;;  %v326_v42 = vor.u32 %v325_v32, %v324_v30  ;;  %v329_v43 = vor.u32 %v328_v35, %v327_v33 }
 0x14c   : > { %v332_v44 = vor.u32 %v331_v38, %v330_v36 }
 0x14d   : > { %v338_v45 = vsel %vm336_vm4, %v326_v42, 2102212464  ;;  %v341_v46 = vsel %vm333_vm3, %v320_v40, %v323_v41  ;;  %v345_v47 = vsel %vm333_vm3, %v323_v41, %v326_v42  ;;  %v342_v49 = vsel %vm336_vm4, %v329_v43, 920167782 }
 0x14e   : > { %v346_v50 = vsel %vm336_vm4, %v332_v44, 1326507024  ;;  %v343_v51 = vsel %vm335_vm5, %v326_v42, %v342_v49  ;;  %v337_v54 = vsel %vm333_vm3, %v317_v48, %v320_v40  ;;  %v339_v55 = vsel %vm335_vm5, %v323_v41, %v338_v45 }
 0x14f   : > { %v347_v52 = vsel %vm335_vm5, %v329_v43, %v346_v50  ;;  %v344_v56 = vsel %vm334_vm6, %v341_v46, %v343_v51  ;;  %v340_v62 = vsel %vm334_vm6, %v337_v54, %v339_v55 }
 0x150   : > { %v348_v57 = vsel %vm334_vm6, %v345_v47, %v347_v52  ;;  %v1000_v60 = vmul.u32.u64.low %v349_v53, %v344_v56  ;;  %v1001_v61 = vmul.u32.u64.high %v349_v53, %v344_v56, %v1000_v60  ;;  %v356_v0 = vmul.u32 %v349_v53, %v340_v62 }
 0x151   : > { %v997_v58 = vmul.u32.u64.low %v349_v53, %v348_v57  ;;  %v998_v59 = vmul.u32.u64.high %v349_v53, %v348_v57, %v997_v58 }
 0x152   : > { %v359_v63 = vadd.s32 1, %v1001_v61 }
 0x153   : > { %vm358_vm7 = vc.u32 %v998_v59, %v1000_v60  ;;  %v357_v13 = vadd.s32 %v1000_v60, %v998_v59 }
 0x154   : > { %v360_v1 = vsel %vm358_vm7, %v359_v63, %v1001_v61 }
 0x155   : > { %v361_v2 = vadd.s32 %v360_v1, %v356_v0 }
 0x157   : > { %v362_v3 = vadd.s32 536870912, %v361_v2 }
 0x159   : > { %v363_v4 = vshrl.u32 %v362_v3, 30 }
 0x15b   : > { %v364_v5 = vshll.u32 %v363_v4, 30  ;;  %v387_v26 = vsub.s32 4, %v363_v4 }
 0x15d   : > { %v365_v6 = vsub.s32 %v361_v2, %v364_v5  ;;  %v388_v29 = vsel %vm303_vm9, %v387_v26, %v363_v4 }
 0x15e   : > { %v390_v31 = vsel %vm302_vm10, 0, %v388_v29 }
 0x15f   : > { %v367_v7 = vsub.s32 0, %v365_v6  ;;  %v394_v32 = vadd.s32 3, %v390_v31 }
 0x161   : > { %v524_v8 = vmin.u32 %v367_v7, %v365_v6  ;;  %v395_v33 = vand.u32 3, %v394_v32 }
 0x163   : > { %v369_v9 = vclz %v524_v8  ;;  %vm400_vm11 = vcmp.eq.s32.totalorder %v395_v33, 2  ;;  %vm397_vm12 = vcmp.eq.s32.totalorder %v395_v33, 0  ;;  %vm396_vm13 = vcmp.lt.s32.totalorder %v395_v33, 2 }
 0x165   : > { %v525_v10 = vadd.s32 4294967294, %v369_v9 }
 0x167   : > { %vm526_vm8 = vcmp.lt.s32.totalorder %v525_v10, 0 }
 0x168   : > { %v372_v12 = vsel %vm526_vm8, 0, %v525_v10 }
 0x169   : > { %v373_v14 = vsub.s32 32, %v372_v12  ;;  %v377_v15 = vsub.s32 4294967266, %v372_v12  ;;  %v374_v16 = vshll.u32 %v365_v6, %v372_v12 }
 0x16b   : > { %v375_v18 = vshrl.u32 %v357_v13, %v373_v14  ;;  %v378_v19 = vadd.s32 127, %v377_v15 }
 0x16d   : > { %v376_v20 = vor.u32 %v375_v18, %v374_v16  ;;  %v379_v21 = vshll.u32 %v378_v19, 23 }
 0x16f   : > { %v380_v22 = vor.u32 4788187, %v379_v21  ;;  %v383_v24 = vcvt.s32.f32 %v376_v20 }
 0x171   : > { %v381_v23 = vand.u32 2147483647, %v380_v22 }
 0x173   : > { %v384_v25 = vmul.f32 %v383_v24, %v381_v23 }
 0x175   : > { %v385_v27 = vxor.u32 2147483648, %v384_v25 }
 0x177   : > { %v386_v28 = vsel %vm303_vm9, %v385_v27, %v384_v25 }
 0x178   : > { %v389_v30 = vsel %vm302_vm10, %v991_v11, %v386_v28 }
 0x179   : > { %641 = vcosq.f32 %v389_v30 }
 0x17a   : > { %643 = vsinq.f32 %v389_v30 }
 0x183   : > { %v642_v34 = vpop.eup %641 }
 0x184   : > { %v644_v35 = vpop.eup %643  ;;  %v401_v36 = vxor.u32 2147483648, %v642_v34 }
 0x185   : > { %v398_v37 = vxor.u32 2147483648, %v644_v35 }
 0x186   : > { %v402_v17 = vsel %vm400_vm11, %v401_v36, %v644_v35 }
 0x187   : > { %v399_v38 = vsel %vm397_vm12, %v642_v34, %v398_v37 }
 0x188   : > { %v403_v39 = vsel %vm396_vm13, %v399_v38, %v402_v17 }
 0x189   : > { %v404_v40 = vsel %vm393_vm14, nan, %v403_v39 }
 0x18a   : > { %405 = vst [vmem:[%s214_s9] sm:$0xff] %v404_v40 }
 0x18b   : > { %716 = shalt.err (!%p713_p5)
}
 0x18c   : > { %s717_s21 = scalar_lea.hbm %s1018_s29, 128  ;;  %s721_s27 = scalar_lea.hbm %s1070_s3, 256 }
 0x18d   : > { %p718_p9 = scmp.ne.s32.totalorder %s1018_s29, %s717_s21  ;;  %p722_p7 = scmp.lt.u32.totalorder %s1018_s29, %s1070_s3 }
 0x18e   : > { %p723_p3 = scmp.lt.u32.totalorder %s721_s27, %s717_s21  ;;  %p725_p4 = scmp.lt.u32.totalorder %s717_s21, %s1018_s29 }
 0x18f   : > { %p719_p1 = pnand %p718_p9, %p921_p10 }
 0x190   : > { %p724_p13 = por %p723_p3, %p722_p7 }
 0x191   : > { %p720_p2 = pneg %p719_p1 }
 0x192   : > { %p726_p6 = por %p725_p4, %p724_p13 }
 0x194   : > { %p727_p8 = pnand %p726_p6, %p720_p2 }
 0x196   : > { %730 = shalt.err (!%p727_p8)
}
 0x197   : > { %563 = dma.vmem_to_hbm [thread:$0]  (%p921_p10), %s1020_s10, 128, %s1018_s29, %s407_s15  }
 0x198 PF: > { %s433_s20 = sand.u32 1, %s769_s12   ;;  %p1088_p12 = scmp.ne.s32.totalorder %s1078_s23, 0 }
 0x199   : > { %p1089_p11 = scmp.ge.s32.totalorder %s789_s17, 2  ;;  %s434_s24 = scalar_lea.sflag [#allocation4], %s433_s20 }
 0x19b   : > { %p574_p0 = pnand %p1089_p11, %p1088_p12 }
 0x19d   : > { %764 = dma.done.wait (!%p574_p0), %s434_s24, 128  }
 0x19e   : > { %766 = vsyncadd (!%p574_p0), %s434_s24, 4294967168  ;;  %s20_s17 = sadd.s32 1, %s789_s17   ;;  %s1090_s12 = smov %s773_s13 }
 0x19f   : > { %p17_p5 = scmp.ge.s32.totalorder %s20_s17, 4   ;;  %s1091_s13 = smov %s777_s14 }
 0x1a0   : > { %s1092_s14 = smov %s930_s5  ;;  %s1093_s15 = smov %s785_s16 }
 0x1a1   : > { %s1094_s16 = smov %s1096_s28  ;;  %19 = sbr.rel (!%p17_p5) target bundleno = 7 (0x7), region = 81 }
 0x1a8   :  { %439 = vsyncpa [#allocation3], 1 }
 0x1a9   :  { %441 = vsyncpa [#allocation3 + $0x1], 1 }
 0x1aa   :  { %442 = vsyncpa [#allocation6], 1 }
 0x1ab   :  { %443 = vsyncpa [#allocation4], 1 }
 0x1ac   :  { %445 = vsyncpa [#allocation4 + $0x1], 1 }

// kernel: tpu_custom_call.1
= control target key start
LH: loop header
LB: loop body
LE: loop exit
PB: predicated region body
PF: predicated region fallthrough
CT: control target
= control target key end

     0   :  { %8 = vsyncpa [#allocation3], 0  ;;  %s1067_s0 = inlined_call_operand.hbm [shape: f32[16,32], index: 0, kind: input, shape index: {}]   ;;  %s1068_s1 = inlined_call_operand.hbm [shape: f32[32,128], index: 1, kind: input, shape index: {}]   ;;  %s1069_s2 = inlined_call_operand.vmem [shape: f32[1,128], index: 2, kind: input, shape index: {}]   ;;  %s1070_s3 = inlined_call_operand.hbm [shape: f32[16,128], index: 3, kind: output, shape index: {}]  }
   0x1   :  { %10 = vsyncpa [#allocation3 + $0x1], 0 }
   0x2   :  { %11 = vsyncpa [#allocation6], 0 }
   0x3   :  { %12 = vsyncpa [#allocation4], 0 }
   0x4   :  { %14 = vsyncpa [#allocation4 + $0x1], 0  ;;  %s825_s12 = smov 0   ;;  %s827_s13 = smov 0  }
   0x5   :  { %s829_s14 = smov 0   ;;  %s831_s15 = smov 0  }
   0x6   :  { %s833_s16 = smov 0   ;;  %s835_s17 = smov 0  }
   0x7 LB: > { %s510_s18 = sadd.s32 4294967295, %s789_s17   ;;  %s511_s19 = sadd.s32 4294967294, %s789_s17   ;;  %s789_s17 = sphi %s835_s17, %s20_s17   ;;  %s785_s16 = sphi %s833_s16, %s1094_s16   ;;  %s781_s15 = sphi %s831_s15, %s1093_s15   ;;  %s777_s14 = sphi %s829_s14, %s1092_s14   ;;  %s773_s13 = sphi %s827_s13, %s1091_s13   ;;  %s769_s12 = sphi %s825_s12, %s1090_s12  }
   0x8   : > { %p52_p0 = scmp.ne.s32.totalorder %s773_s13, %s769_s12  ;;  %p859_p1 = scmp.eq.s32.totalorder %s510_s18, 0 }
   0x9   : > { %p863_p2 = scmp.eq.s32.totalorder %s510_s18, 1  ;;  %p126_p3 = scmp.eq.s32.totalorder %s511_s19, 1 }
   0xa   : > { %s1075_s20 = scalar_select %p859_p1, 1, 0 }
   0xb   : > { %s1076_s21 = scalar_select %p863_p2, 1, 0 }
   0xc   : > { %p869_p4 = por %p859_p1, %p52_p0  ;;  %p512_p5 = scmp.ge.s32.totalorder %s789_s17, 1 }
   0xd   : > { %p874_p6 = por %p126_p3, %p52_p0  ;;  %p133_p7 = scmp.lt.s32.totalorder %s789_s17, 3 }
   0xe   : > { %s1077_s22 = scalar_select %p869_p4, 1, 0 }
   0xf   : > { %s1078_s23 = scalar_select %p874_p6, 1, 0 }
  0x10   : > { %p879_p8 = pnand %p512_p5, %p133_p7  ;;  %s791_s25 = smov [#allocation5]  }
  0x11   : > { %s145_s26 = sshll.u32 %s791_s25, 4  ;;  %s32_s28 = sadd.s32 1, %s785_s16  ;;  %s146_s26 = int_to_ptr.vmem [resolvable:$true] %s145_s26 }
  0x12   : > { %s1079_s24 = scalar_select %p879_p8, 1, 0 }
  0x13   : > { %p565_p9 = pneg %p879_p8  ;;  %s645_s4 = scalar_lea.hbm %s1068_s1, 512 }
  0x14   : > { %p646_p12 = scmp.ne.s32.totalorder %s1068_s1, %s645_s4  ;;  %p652_p5 = scmp.lt.u32.totalorder %s645_s4, %s1068_s1 }
  0x15   : > { %p888_p11 = pnand %p565_p9, %p859_p1 }
  0x17   : > { %p647_p13 = pneg %p888_p11 }
  0x19   : > { %p648_p0 = pnand %p647_p13, %p646_p12 }
  0x1b   : > { %p649_p3 = pneg %p648_p0 }
  0x1d   : > { %p654_p7 = pnand %p652_p5, %p649_p3 }
  0x1f   : > { %657 = shalt.err (!%p654_p7)
}
  0x20   : > { %s658_s9 = scalar_lea.vmem %s146_s26, 512  ;;  %p666_p1 = scmp.lt.s32.totalorder %s146_s26, %s146_s26 }
  0x21   : > { %p659_p9 = scmp.ne.s32.totalorder %s146_s26, %s658_s9  ;;  %p667_p4 = scmp.lt.s32.totalorder %s658_s9, %s658_s9 }
  0x23   : > { %p661_p10 = pnand %p659_p9, %p647_p13  ;;  %p668_p8 = por %p667_p4, %p666_p1 }
  0x25   : > { %p662_p6 = pneg %p661_p10 }
  0x27   : > { %p669_p2 = pnand %p668_p8, %p662_p6 }
  0x29   : > { %672 = shalt.err (!%p669_p2)
}
  0x2a   : > { %s792_s10 = smov 128   ;;  %s793_s11 = smov 8  }
  0x2b   : > { %568 = dma.hbm_to_vmem [thread:$0]  (!%p888_p11), %s1068_s1, 512, %s146_s26, [#allocation6], %s792_s10, %s792_s10, %s793_s11  }
  0x2c   : > { %p34_p1 = scmp.ge.s32.totalorder %s32_s28, 2  ;;  %s39_s25 = sadd.s32 1, %s777_s14 }
  0x2d   : > { %p46_p2 = scmp.ne.s32.totalorder %s777_s14, %s773_s13  ;;  %p47_p4 = scmp.eq.s32.totalorder %s789_s17, 0 }
  0x2e   : > { %s1096_s28 = smov (%p34_p1, %s32_s28), 0  ;;  %p1082_p8 = scmp.ne.s32.totalorder %s1076_s21, 0 }
  0x2f   : > { %p915_p6 = por %p47_p4, %p46_p2  ;;  %s36_s27 = ssub.s32 %s785_s16, %s1096_s28 }
  0x30   : > { %p921_p10 = por %p1082_p8, %p46_p2  ;;  %p578_p12 = scmp.lt.s32.totalorder %s789_s17, 2 }
  0x31   : > { %p37_p11 = scmp.eq.s32.totalorder %s36_s27, 0  ;;  %s162_s26 = sand.u32 1, %s777_s14  }
  0x32   : > { %s515_s4 = sshll.u32 %s162_s26, 3  ;;  %s516_s6 = sshll.u32 %s785_s16, 7 }
  0x33   : > { %s930_s5 = scalar_select %p37_p11, %s777_s14, %s39_s25  }
  0x34   : > { %s936_s9 = scalar_lea.hbm %s1067_s0, %s516_s6  ;;  %s166_s21 = scalar_lea.vmem [#allocation2], %s515_s4 }
  0x35   : > { %s173_s10 = sshll.u32 %s166_s21, 4  ;;  %p942_p13 = pnand %p578_p12, %p915_p6  ;;  %s938_s10 = int_to_ptr.vmem [resolvable:$true] %s173_s10 }
  0x36   : > { %s163_s18 = scalar_lea.sflag [#allocation3], %s162_s26  ;;  %s673_s19 = scalar_lea.hbm %s936_s9, 128 }
  0x37   : > { %p674_p0 = scmp.ne.s32.totalorder %s936_s9, %s673_s19  ;;  %p675_p3 = pneg %p942_p13 }
  0x38   : > { %s678_s4 = scalar_lea.hbm %s1067_s0, 256  ;;  %p679_p9 = scmp.lt.u32.totalorder %s936_s9, %s1067_s0 }
  0x39   : > { %p676_p5 = pnand %p675_p3, %p674_p0  ;;  %p680_p1 = scmp.lt.u32.totalorder %s678_s4, %s673_s19 }
  0x3a   : > { %p682_p4 = scmp.lt.u32.totalorder %s673_s19, %s936_s9 }
  0x3b   : > { %p677_p7 = pneg %p676_p5  ;;  %p681_p2 = por %p680_p1, %p679_p9 }
  0x3d   : > { %p683_p6 = por %p682_p4, %p681_p2 }
  0x3f   : > { %p684_p8 = pnand %p683_p6, %p677_p7 }
  0x41   : > { %687 = shalt.err (!%p684_p8)
}
  0x42   : > { %s688_s26 = scalar_lea.vmem %s938_s10, 128  ;;  %s794_s7 = smov [#allocation2]  }
  0x43   : > { %p689_p12 = scmp.ne.s32.totalorder %s938_s10, %s688_s26  ;;  %s693_s8 = sshll.u32 %s794_s7, 4  ;;  %s694_s8 = int_to_ptr.vmem [resolvable:$false] %s693_s8 }
  0x44   : > { %s695_s21 = scalar_lea.vmem %s694_s8, 256  ;;  %p696_p5 = scmp.lt.s32.totalorder %s938_s10, %s694_s8 }
  0x45   : > { %p691_p11 = pnand %p689_p12, %p675_p3  ;;  %p697_p9 = scmp.lt.s32.totalorder %s695_s21, %s688_s26 }
  0x47   : > { %p692_p0 = pneg %p691_p11  ;;  %p698_p1 = por %p697_p9, %p696_p5 }
  0x49   : > { %p699_p2 = pnand %p698_p1, %p692_p0 }
  0x4b   : > { %702 = shalt.err (!%p699_p2)
}
  0x4c   : > { %572 = dma.hbm_to_vmem [thread:$0]  (!%p942_p13), %s936_s9, 128, %s938_s10, %s163_s18  }
  0x4d   : > { %p1085_p7 = scmp.ne.s32.totalorder %s1079_s24, 0 }
  0x4e   : > { %s974_s19 = sand.u32 (!%p1085_p7), 1, %s773_s13   ;;  %p1086_p3 = scmp.ne.s32.totalorder (!%p1085_p7), %s1077_s22, 0 }
  0x4f   : > { %182 = sbr.rel (%p1085_p7) target bundleno = 408 (0x198), region = 32  ;;  %s518_s25 = sshll.u32 (!%p1085_p7), %s974_s19, 3 }
  0x50   : > { %s185_s27 = scalar_lea.sflag (!%p1085_p7), [#allocation3], %s974_s19  ;;  %s188_s4 = scalar_lea.vmem (!%p1085_p7), [#allocation2], %s518_s25 }
  0x56   : > { %756 = dma.done.wait (%p1086_p3), %s185_s27, 128  }
  0x57   : > { %758 = vsyncadd (%p1086_p3), %s185_s27, 4294967168  ;;  %p1087_p13 = scmp.ne.s32.totalorder %s1075_s20, 0 }
  0x59   : > { %760 = dma.done.wait (%p1087_p13), [#allocation6], 512  }
  0x5a   : > { %762 = vsyncadd (%p1087_p13), [#allocation6], 4294966784  ;;  %v795_v0 = vmov 0.0|0.0   ;;  %vm796_vm0 = vmmov 0   ;;  %v797_v1 = vmov 0.0   ;;  %v216_v2 = vld [vmem:[#allocation5] sm:$0xff] }
  0x5b   : > { %547 = vmatprep.subr.bf16.mxu0 %v795_v0  ;;  %544 = vmatprep.mubr.msk.f32.mxu0 %vm796_vm0, %v797_v1  ;;  %v217_v3 = vld [vmem:[#allocation5 + $0x8] sm:$0xff]  ;;  %v218_v4 = vld [vmem:[#allocation5 + $0x10] sm:$0xff]  ;;  %v219_v6 = vld [vmem:[#allocation5 + $0x18] sm:$0xff]  ;;  %vm227_vm1 = vcmask 261120   ;;  %v798_v23 = vmov 683565275  }
  0x5c   : > { %v548_v5 = vpack.c.bf16 %v217_v3, %v216_v2  ;;  %v551_v7 = vpack.c.bf16 %v219_v6, %v218_v4  ;;  %v215_v8 = vld [vmem:[%s188_s4] sm:$0xff]  ;;  %v799_v25 = vmov 2475754826   ;;  %v800_v28 = vmov 2131351028   ;;  %s528_s24 = sshll.u32 %s781_s15, 7 }
  0x5d   : > { %v521_v9 = vld [vmem:[%s1069_s2] ss:$0 sm:$0xff]  ;;  %v801_v31 = vmov 2102212464   ;;  %v802_v34 = vmov 920167782   ;;  %s1018_s29 = scalar_lea.hbm %s1070_s3, %s528_s24 }
  0x5e   : > { %549 = vmatpush3.bf16.msra.mxu0 %v548_v5  ;;  %v803_v37 = vmov 1326507024   ;;  %s214_s9 = scalar_lea.vmem [#allocation7], %s518_s25  ;;  %s407_s15 = scalar_lea.sflag [#allocation4], %s974_s19 }
  0x5f   : > { %550 = vmatprep.subr.bf16.mxu0 %v795_v0  ;;  %s421_s10 = sshll.u32 %s214_s9, 4  ;;  %s804_s26 = smov [#allocation7]   ;;  %s1020_s10 = int_to_ptr.vmem [resolvable:$true] %s421_s10 }
  0x60   : > { %s703_s6 = scalar_lea.vmem %s1020_s10, 128  ;;  %s707_s7 = sshll.u32 %s804_s26, 4  ;;  %s708_s7 = int_to_ptr.vmem [resolvable:$false] %s707_s7 }
  0x61   : > { %p704_p4 = scmp.ne.s32.totalorder %s1020_s10, %s703_s6  ;;  %s709_s8 = scalar_lea.vmem %s708_s7, 256 }
  0x62   : > { %552 = vmatpush3.bf16.msra.mxu0 %v551_v7  ;;  %p710_p12 = scmp.lt.s32.totalorder %s1020_s10, %s708_s7  ;;  %p711_p11 = scmp.lt.s32.totalorder %s709_s8, %s703_s6 }
  0x63   : > { %p705_p6 = pnand %p704_p4, %p921_p10 }
  0x64   : > { %p712_p0 = por %p711_p11, %p710_p12 }
  0x65   : > { %545 = vmatmul.mubr.msk.f32.vlgmr.msra.gmra.mrb[0].mxu0 %vm227_vm1, %v215_v8  ;;  %p706_p8 = pneg %p705_p6 }
  0x67   : > { %p713_p5 = pnand %p712_p0, %p706_p8 }
 0x138   : > { %v297_v10 = vpop.f32.mrb[0].mxu0 }
 0x139   : > { %v991_v11 = vadd.f32 %v521_v9, %v297_v10  ;;  %v546_v12 = vpop.f32.mrb[1].mxu0 }
 0x13b   : > { %v304_v13 = vand.u32 2139095040, %v991_v11  ;;  %v301_v17 = vand.u32 2147483647, %v991_v11  ;;  %vm303_vm9 = vcmp.lt.s32.totalorder %v991_v11, 0  ;;  %vm393_vm14 = vweird.f32 %v991_v11 }
 0x13d   : > { %v305_v14 = vshrl.u32 %v304_v13, 23  ;;  %v308_v20 = vand.u32 8388607, %v301_v17  ;;  %vm302_vm10 = vcmp.le.f32.partialorder %v301_v17, 0.7853982 }
 0x13f   : > { %v523_v15 = vadd.s32 4294967169, %v305_v14  ;;  %v309_v39 = vor.u32 8388608, %v308_v20 }
 0x141   : > { %v311_v16 = vadd.s32 1, %v523_v15  ;;  %v349_v53 = vshll.u32 %v309_v39, 8 }
 0x143   : > { %vm312_vm2 = vcmp.gt.s32.totalorder %v311_v16, 0 }
 0x144   : > { %v313_v18 = vsel %vm312_vm2, %v311_v16, 0 }
 0x145   : > { %v315_v19 = vand.u32 31, %v313_v18  ;;  %v314_v22 = vshrl.u32 %v313_v18, 5 }
 0x147   : > { %v316_v21 = vsub.s32 32, %v315_v19  ;;  %v318_v24 = vshll.u32 %v798_v23, %v315_v19  ;;  %v321_v26 = vshll.u32 %v799_v25, %v315_v19  ;;  %v324_v30 = vshll.u32 %v800_v28, %v315_v19 }
 0x148   : > { %v327_v33 = vshll.u32 %v801_v31, %v315_v19  ;;  %v330_v36 = vshll.u32 %v802_v34, %v315_v19  ;;  %vm333_vm3 = vcmp.lt.s32.totalorder %v314_v22, 1  ;;  %vm336_vm4 = vcmp.lt.s32.totalorder %v314_v22, 4 }
 0x149   : > { %v319_v27 = vshrl.u32 %v799_v25, %v316_v21  ;;  %v322_v29 = vshrl.u32 %v800_v28, %v316_v21  ;;  %v325_v32 = vshrl.u32 %v801_v31, %v316_v21  ;;  %v328_v35 = vshrl.u32 %v802_v34, %v316_v21 }
 0x14a   : > { %v331_v38 = vshrl.u32 %v803_v37, %v316_v21  ;;  %v317_v48 = vshrl.u32 %v798_v23, %v316_v21  ;;  %vm335_vm5 = vcmp.lt.s32.totalorder %v314_v22, 3  ;;  %vm334_vm6 = vcmp.lt.s32.totalorder %v314_v22, 2 }
 0x14b   : > { %v320_v40 = vor.u32 %v319_v27, %v318_v24  ;;  %v323_v41 = vor.u32 %v322_v29, %v321_v26  ;;  %v326_v42 = vor.u32 %v325_v32, %v324_v30  ;;  %v329_v43 = vor.u32 %v328_v35, %v327_v33 }
 0x14c   : > { %v332_v44 = vor.u32 %v331_v38, %v330_v36 }
 0x14d   : > { %v338_v45 = vsel %vm336_vm4, %v326_v42, 2102212464  ;;  %v341_v46 = vsel %vm333_vm3, %v320_v40, %v323_v41  ;;  %v345_v47 = vsel %vm333_vm3, %v323_v41, %v326_v42  ;;  %v342_v49 = vsel %vm336_vm4, %v329_v43, 920167782 }
 0x14e   : > { %v346_v50 = vsel %vm336_vm4, %v332_v44, 1326507024  ;;  %v343_v51 = vsel %vm335_vm5, %v326_v42, %v342_v49  ;;  %v337_v54 = vsel %vm333_vm3, %v317_v48, %v320_v40  ;;  %v339_v55 = vsel %vm335_vm5, %v323_v41, %v338_v45 }
 0x14f   : > { %v347_v52 = vsel %vm335_vm5, %v329_v43, %v346_v50  ;;  %v344_v56 = vsel %vm334_vm6, %v341_v46, %v343_v51  ;;  %v340_v62 = vsel %vm334_vm6, %v337_v54, %v339_v55 }
 0x150   : > { %v348_v57 = vsel %vm334_vm6, %v345_v47, %v347_v52  ;;  %v1000_v60 = vmul.u32.u64.low %v349_v53, %v344_v56  ;;  %v1001_v61 = vmul.u32.u64.high %v349_v53, %v344_v56, %v1000_v60  ;;  %v356_v0 = vmul.u32 %v349_v53, %v340_v62 }
 0x151   : > { %v997_v58 = vmul.u32.u64.low %v349_v53, %v348_v57  ;;  %v998_v59 = vmul.u32.u64.high %v349_v53, %v348_v57, %v997_v58 }
 0x152   : > { %v359_v63 = vadd.s32 1, %v1001_v61 }
 0x153   : > { %vm358_vm7 = vc.u32 %v998_v59, %v1000_v60  ;;  %v357_v13 = vadd.s32 %v1000_v60, %v998_v59 }
 0x154   : > { %v360_v1 = vsel %vm358_vm7, %v359_v63, %v1001_v61 }
 0x155   : > { %v361_v2 = vadd.s32 %v360_v1, %v356_v0 }
 0x157   : > { %v362_v3 = vadd.s32 536870912, %v361_v2 }
 0x159   : > { %v363_v4 = vshrl.u32 %v362_v3, 30 }
 0x15b   : > { %v364_v5 = vshll.u32 %v363_v4, 30  ;;  %v387_v26 = vsub.s32 4, %v363_v4 }
 0x15d   : > { %v365_v6 = vsub.s32 %v361_v2, %v364_v5  ;;  %v388_v29 = vsel %vm303_vm9, %v387_v26, %v363_v4 }
 0x15e   : > { %v390_v31 = vsel %vm302_vm10, 0, %v388_v29 }
 0x15f   : > { %v367_v7 = vsub.s32 0, %v365_v6  ;;  %v394_v32 = vadd.s32 3, %v390_v31 }
 0x161   : > { %v524_v8 = vmin.u32 %v367_v7, %v365_v6  ;;  %v395_v33 = vand.u32 3, %v394_v32 }
 0x163   : > { %v369_v9 = vclz %v524_v8  ;;  %vm400_vm11 = vcmp.eq.s32.totalorder %v395_v33, 2  ;;  %vm397_vm12 = vcmp.eq.s32.totalorder %v395_v33, 0  ;;  %vm396_vm13 = vcmp.lt.s32.totalorder %v395_v33, 2 }
 0x165   : > { %v525_v10 = vadd.s32 4294967294, %v369_v9 }
 0x167   : > { %vm526_vm8 = vcmp.lt.s32.totalorder %v525_v10, 0 }
 0x168   : > { %v372_v12 = vsel %vm526_vm8, 0, %v525_v10 }
 0x169   : > { %v373_v14 = vsub.s32 32, %v372_v12  ;;  %v377_v15 = vsub.s32 4294967266, %v372_v12  ;;  %v374_v16 = vshll.u32 %v365_v6, %v372_v12 }
 0x16b   : > { %v375_v18 = vshrl.u32 %v357_v13, %v373_v14  ;;  %v378_v19 = vadd.s32 127, %v377_v15 }
 0x16d   : > { %v376_v20 = vor.u32 %v375_v18, %v374_v16  ;;  %v379_v21 = vshll.u32 %v378_v19, 23 }
 0x16f   : > { %v380_v22 = vor.u32 4788187, %v379_v21  ;;  %v383_v24 = vcvt.s32.f32 %v376_v20 }
 0x171   : > { %v381_v23 = vand.u32 2147483647, %v380_v22 }
 0x173   : > { %v384_v25 = vmul.f32 %v383_v24, %v381_v23 }
 0x175   : > { %v385_v27 = vxor.u32 2147483648, %v384_v25 }
 0x177   : > { %v386_v28 = vsel %vm303_vm9, %v385_v27, %v384_v25 }
 0x178   : > { %v389_v30 = vsel %vm302_vm10, %v991_v11, %v386_v28 }
 0x179   : > { %641 = vcosq.f32 %v389_v30 }
 0x17a   : > { %643 = vsinq.f32 %v389_v30 }
 0x183   : > { %v642_v34 = vpop.eup %641 }
 0x184   : > { %v644_v35 = vpop.eup %643  ;;  %v401_v36 = vxor.u32 2147483648, %v642_v34 }
 0x185   : > { %v398_v37 = vxor.u32 2147483648, %v644_v35 }
 0x186   : > { %v402_v17 = vsel %vm400_vm11, %v401_v36, %v644_v35 }
 0x187   : > { %v399_v38 = vsel %vm397_vm12, %v642_v34, %v398_v37 }
 0x188   : > { %v403_v39 = vsel %vm396_vm13, %v399_v38, %v402_v17 }
 0x189   : > { %v404_v40 = vsel %vm393_vm14, nan, %v403_v39 }
 0x18a   : > { %405 = vst [vmem:[%s214_s9] sm:$0xff] %v404_v40 }
 0x18b   : > { %716 = shalt.err (!%p713_p5)
}
 0x18c   : > { %s717_s21 = scalar_lea.hbm %s1018_s29, 128  ;;  %s721_s27 = scalar_lea.hbm %s1070_s3, 256 }
 0x18d   : > { %p718_p9 = scmp.ne.s32.totalorder %s1018_s29, %s717_s21  ;;  %p722_p7 = scmp.lt.u32.totalorder %s1018_s29, %s1070_s3 }
 0x18e   : > { %p723_p3 = scmp.lt.u32.totalorder %s721_s27, %s717_s21  ;;  %p725_p4 = scmp.lt.u32.totalorder %s717_s21, %s1018_s29 }
 0x18f   : > { %p719_p1 = pnand %p718_p9, %p921_p10 }
 0x190   : > { %p724_p13 = por %p723_p3, %p722_p7 }
 0x191   : > { %p720_p2 = pneg %p719_p1 }
 0x192   : > { %p726_p6 = por %p725_p4, %p724_p13 }
 0x194   : > { %p727_p8 = pnand %p726_p6, %p720_p2 }
 0x196   : > { %730 = shalt.err (!%p727_p8)
}
 0x197   : > { %563 = dma.vmem_to_hbm [thread:$0]  (%p921_p10), %s1020_s10, 128, %s1018_s29, %s407_s15  }
 0x198 PF: > { %s433_s20 = sand.u32 1, %s769_s12   ;;  %p1088_p12 = scmp.ne.s32.totalorder %s1078_s23, 0 }
 0x199   : > { %p1089_p11 = scmp.ge.s32.totalorder %s789_s17, 2  ;;  %s434_s24 = scalar_lea.sflag [#allocation4], %s433_s20 }
 0x19b   : > { %p574_p0 = pnand %p1089_p11, %p1088_p12 }
 0x19d   : > { %764 = dma.done.wait (!%p574_p0), %s434_s24, 128  }
 0x19e   : > { %766 = vsyncadd (!%p574_p0), %s434_s24, 4294967168  ;;  %s20_s17 = sadd.s32 1, %s789_s17   ;;  %s1090_s12 = smov %s773_s13 }
 0x19f   : > { %p17_p5 = scmp.ge.s32.totalorder %s20_s17, 4   ;;  %s1091_s13 = smov %s777_s14 }
 0x1a0   : > { %s1092_s14 = smov %s930_s5  ;;  %s1093_s15 = smov %s785_s16 }
 0x1a1   : > { %s1094_s16 = smov %s1096_s28  ;;  %19 = sbr.rel (!%p17_p5) target bundleno = 7 (0x7), region = 81 }
 0x1a8   :  { %439 = vsyncpa [#allocation3], 1 }
 0x1a9   :  { %441 = vsyncpa [#allocation3 + $0x1], 1 }
 0x1aa   :  { %442 = vsyncpa [#allocation6], 1 }
 0x1ab   :  { %443 = vsyncpa [#allocation4], 1 }
 0x1ac   :  { %445 = vsyncpa [#allocation4 + $0x1], 1 }

</bundles_post_ra>
